<compile_context>
chip_gen: v6e
topology: v6e:2x2x1
jax: 0.10.0
libtpu: 0.0.40
codegen_flags: <defaults>
</compile_context>

<pallas_src>
import functools
import math

import jax
import jax.numpy as jnp
from jax import lax
from jax.experimental import pallas as pl
from jax.experimental.pallas import tpu as pltpu


def _round_up(x, m):
    return (x + m - 1) // m * m


# ----------------------------------------------------------------------------
# Activation (used both inside the Pallas kernels and in the JAX reference).
# ----------------------------------------------------------------------------
def _apply_act(y, act):
    if act is None or act == "identity":
        return y
    if act == "relu":
        return jnp.maximum(y, 0.0)
    if act == "gelu":
        # tanh approximation (EUP-friendly); same form used by the reference.
        return jax.nn.gelu(y, approximate=True)
    if act == "hardswish":
        return y * jnp.clip(y + 3.0, 0.0, 6.0) * (1.0 / 6.0)
    raise ValueError(f"unsupported act: {act}")


# ----------------------------------------------------------------------------
# Matmul kernels (grouped / dense convolutions via im2col).
#   w_ref : (tco, K_pad) or (tco, tk)   bf16 weights
#   p_ref : (tk, tn)                     bf16 im2col patches (K sublanes, N lanes)
#   o_ref : (tco, tn)                    output block (lane-dense N)
# Grid: (B*G, CO, NT, KT) — KT (reduction) is last / "arbitrary".
# ----------------------------------------------------------------------------
def _mm_kernel_f32(w_ref, p_ref, o_ref, *, act, tk, nk):
    """f32 output: accumulate directly into o_ref (no scratch)."""
    if nk == 1:
        y = jnp.dot(w_ref[...], p_ref[...], preferred_element_type=jnp.float32)
        o_ref[...] = _apply_act(y, act)
        return

    kt = pl.program_id(3)
    if w_ref.shape[1] == tk:                  # per-step weight block
        w = w_ref[...]
    else:                                     # K-resident weight: slice the chunk
        w = w_ref[:, pl.ds(pl.multiple_of(kt * tk, tk), tk)]
    y = jnp.dot(w, p_ref[...], preferred_element_type=jnp.float32)

    @pl.when(kt == 0)
    def _():
        o_ref[...] = y

    @pl.when(kt > 0)
    def _():
        o_ref[...] += y

    if act is not None and act != "identity":
        @pl.when(kt == nk - 1)
        def _():
            o_ref[...] = _apply_act(o_ref[...], act)


def _mm_kernel_acc(w_ref, p_ref, o_ref, acc_ref, *, act, tk, nk):
    """Narrow output dtypes: f32 VMEM scratch accumulator."""
    kt = pl.program_id(3)

    @pl.when(kt == 0)
    def _():
        acc_ref[...] = jnp.zeros_like(acc_ref)

    if w_ref.shape[1] == tk:
        w = w_ref[...]
    else:
        w = w_ref[:, pl.ds(pl.multiple_of(kt * tk, tk), tk)]
    acc_ref[...] += jnp.dot(w, p_ref[...], preferred_element_type=jnp.float32)

    @pl.when(kt == nk - 1)
    def _():
        o_ref[...] = _apply_act(acc_ref[...], act).astype(o_ref.dtype)


# ----------------------------------------------------------------------------
# Depthwise kernel: VPU accumulation over kh*kw taps.
#   w_ref : (tc, T)          per-channel tap weights (bf16)
#   t_ref : (T, tc, tn)      shifted input taps (bf16): channels sublanes, N lanes
#   o_ref : (tc, tn)
# ----------------------------------------------------------------------------
def _dw_kernel(w_ref, t_ref, o_ref, *, n_taps, act):
    wv = w_ref[...].astype(jnp.float32)
    acc = t_ref[0].astype(jnp.float32) * wv[:, 0:1]
    for t in range(1, n_taps):
        acc = acc + t_ref[t].astype(jnp.float32) * wv[:, t:t + 1]
    o_ref[...] = _apply_act(acc, act).astype(o_ref.dtype)


# ----------------------------------------------------------------------------
# Tiling / im2col helpers.
# ----------------------------------------------------------------------------
def _pick_lane_tile(n, max_tile):
    """Return (n_pad, tn) with tn | n_pad.  Prefer lane-dense (>=512) tiles;
    when a single full-dim block covers n, use it unpadded (no copy)."""
    if n <= max_tile:
        return n, n
    n_pad = _round_up(n, 128)
    for t in (max_tile, 1024, 512):
        if t <= max_tile and n_pad % t == 0:
            return n_pad, t
    return _round_up(n, 512), 512


def _im2col_taps(x, kh, kw, stride, pad, dilation, Hout, Wout):
    """List of kh*kw shifted/strided views, each (B, C, Hout, Wout)."""
    B, C, H, W = x.shape
    x_pad = jnp.pad(x, ((0, 0), (0, 0), (pad, pad), (pad, pad))) if pad else x
    taps = []
    for i in range(kh):
        for j in range(kw):
            h0, w0 = i * dilation, j * dilation
            taps.append(lax.slice(
                x_pad, (0, 0, h0, w0),
                (B, C, h0 + (Hout - 1) * stride + 1,
                 w0 + (Wout - 1) * stride + 1),
                (1, 1, stride, stride)))
    return taps


# ----------------------------------------------------------------------------
# Grouped / dense convolution path (im2col + MXU matmul).
# ----------------------------------------------------------------------------
def _conv_matmul(x, w, *, stride, pad, dilation, groups, act, Hout, Wout, out_dtype):
    B, Cin, H, W = x.shape
    Cout, Cin_g, kh, kw = w.shape
    G = groups
    Cout_g = Cout // G
    N = Hout * Wout
    K = Cin_g * kh * kw

    # bf16 operands: half the im2col / DMA bytes, native MXU throughput.
    x = x.astype(jnp.bfloat16)
    w = w.astype(jnp.bfloat16)

    # --- patches (B*G, K, N); K ordered (cin_g, kh, kw) ----------------------
    if kh == 1 and kw == 1:
        # 1x1 conv: im2col is a pure (strided) reshape — no tap expansion.
        x_p = jnp.pad(x, ((0, 0), (0, 0), (pad, pad), (pad, pad))) if pad else x
        if stride > 1:
            x_p = x_p[:, :, ::stride, ::stride]
        x_p = x_p[:, :, :Hout, :Wout]
        patches = x_p.reshape(B * G, K, N)
    else:
        taps = _im2col_taps(x, kh, kw, stride, pad, dilation, Hout, Wout)
        patches = jnp.stack(taps, axis=2).reshape(B * G, K, N)

    w_mm = w.reshape(G, Cout_g, K)

    # --- tile sizes ----------------------------------------------------------
    N_pad, tn = _pick_lane_tile(N, 2048)

    if K <= 1024:
        tk, K_pad = K, K
    elif K % 1024 == 0:
        tk, K_pad = 1024, K
    elif K % 512 == 0:
        tk, K_pad = 512, K
    else:
        tk, K_pad = 512, _round_up(K, 512)
    nk = K_pad // tk

    Cout_gp = _round_up(Cout_g, 8)
    if Cout_gp <= 256:
        tco = Cout_gp
    else:
        tco = next(t for t in (256, 128, 64, 32, 16, 8) if Cout_gp % t == 0)

    # Keep the weight block VMEM-resident across (b, nt, kt) when small enough.
    w_resident = (nk == 1) or (tco * K_pad * 2 <= (4 << 20))

    # --- alignment padding (weights are tiny; patches only when required) ----
    if K_pad != K or N_pad != N:
        patches = jnp.pad(patches, ((0, 0), (0, K_pad - K), (0, N_pad - N)))
    if Cout_gp != Cout_g or K_pad != K:
        w_mm = jnp.pad(w_mm, ((0, 0), (0, Cout_gp - Cout_g), (0, K_pad - K)))

    grid = (B * G, Cout_gp // tco, N_pad // tn, nk)

    if G == 1:
        w_idx = ((lambda bg, co, nt, kt: (0, co, 0)) if w_resident
                 else (lambda bg, co, nt, kt: (0, co, kt)))
    else:
        w_idx = ((lambda bg, co, nt, kt: (bg % G, co, 0)) if w_resident
                 else (lambda bg, co, nt, kt: (bg % G, co, kt)))
    w_spec = pl.BlockSpec((None, tco, K_pad if w_resident else tk), w_idx)
    p_spec = pl.BlockSpec((None, tk, tn), lambda bg, co, nt, kt: (bg, kt, nt))
    o_spec = pl.BlockSpec((None, tco, tn), lambda bg, co, nt, kt: (bg, co, nt))

    direct = jnp.dtype(out_dtype) == jnp.dtype(jnp.float32)
    out_itemsize = jnp.dtype(out_dtype).itemsize
    if direct:
        kernel = functools.partial(_mm_kernel_f32, act=act, tk=tk, nk=nk)
        scratch = ()
    else:
        kernel = functools.partial(_mm_kernel_acc, act=act, tk=tk, nk=nk)
        scratch = (pltpu.VMEM((tco, tn), jnp.float32),)

    # Rough pipelined-buffer footprint; raise the scoped VMEM limit only when
    # the default (16/32 MiB) could be too small.  Tiles are capped so this
    # stays well inside v7x's 64 MiB physical VMEM.
    est = (2 * tk * tn * 2
           + 2 * tco * (K_pad if w_resident else tk) * 2
           + 2 * tco * tn * out_itemsize
           + (0 if direct else tco * tn * 4))
    cp = dict(dimension_semantics=("parallel", "parallel", "parallel", "arbitrary"))
    if est > (12 << 20):
        cp["vmem_limit_bytes"] = int(min(est + (16 << 20), 48 << 20))

    out = pl.pallas_call(
        kernel,
        out_shape=jax.ShapeDtypeStruct((B * G, Cout_gp, N_pad), out_dtype),
        grid=grid,
        in_specs=[w_spec, p_spec],
        out_specs=o_spec,
        scratch_shapes=scratch,
        compiler_params=pltpu.CompilerParams(**cp),
    )(w_mm, patches)

    out = out.reshape(B, G, Cout_gp, N_pad)[:, :, :Cout_g, :N]
    return out.reshape(B, Cout, Hout, Wout)


# ----------------------------------------------------------------------------
# Depthwise path (groups == Cin): VPU tap accumulation, channels on sublanes.
# ----------------------------------------------------------------------------
def _conv_depthwise(x, w, *, stride, pad, dilation, groups, act, Hout, Wout, out_dtype):
    B, Cin, H, W = x.shape
    Cout, _, kh, kw = w.shape
    Cout_g = Cout // groups
    T = kh * kw
    N = Hout * Wout

    x = x.astype(jnp.bfloat16)
    w_dw = w.reshape(Cout, T).astype(jnp.bfloat16)

    taps = _im2col_taps(x, kh, kw, stride, pad, dilation, Hout, Wout)
    taps = jnp.stack(taps, axis=1)                  # (B, T, Cin, Hout, Wout)
    if Cout_g > 1:                                  # channel multiplier
        taps = jnp.repeat(taps, Cout_g, axis=2)     # out channel c uses group c//Cout_g
    taps = taps.reshape(B, T, Cout, N)

    # --- tiles: channels on sublanes, N on lanes -----------------------------
    N_pad, tn = _pick_lane_tile(N, 1024)
    C_pad = _round_up(Cout, 8)
    if C_pad <= 128:
        tc = C_pad
    else:
        tc = next(t for t in (128, 64, 32, 16, 8) if C_pad % t == 0)
    while tc > 8 and C_pad % (tc // 2) == 0 and 4 * T * tc * tn > (12 << 20):
        tc //= 2

    if C_pad != Cout or N_pad != N:
        taps = jnp.pad(taps, ((0, 0), (0, 0), (0, C_pad - Cout), (0, N_pad - N)))
    if C_pad != Cout:
        w_dw = jnp.pad(w_dw, ((0, C_pad - Cout), (0, 0)))

    grid = (B, C_pad // tc, N_pad // tn)

    out = pl.pallas_call(
        functools.partial(_dw_kernel, n_taps=T, act=act),
        out_shape=jax.ShapeDtypeStruct((B, C_pad, N_pad), out_dtype),
        grid=grid,
        in_specs=[
            pl.BlockSpec((tc, T), lambda b, ci, nt: (ci, 0)),
            pl.BlockSpec((None, T, tc, tn), lambda b, ci, nt: (b, 0, ci, nt)),
        ],
        out_specs=pl.BlockSpec((None, tc, tn), lambda b, ci, nt: (b, ci, nt)),
        compiler_params=pltpu.CompilerParams(
            dimension_semantics=("parallel", "parallel", "parallel")),
    )(w_dw, taps)

    out = out[:, :Cout, :N]
    return out.reshape(B, Cout, Hout, Wout)


# ----------------------------------------------------------------------------
# Public entry point: Conv2d (bias=False) + optional activation.
# ----------------------------------------------------------------------------
@functools.partial(jax.jit,
                   static_argnames=("stride", "pad", "dilation", "groups", "act"))
def conv2d_bn_pallas(x, w, *, stride=1, pad=0, dilation=1, groups=1, act=None):
    B, Cin, H, W = x.shape
    Cout, Cin_g, kh, kw = w.shape
    assert Cin == Cin_g * groups and Cout % groups == 0

    Hout = (H + 2 * pad - dilation * (kh - 1) - 1) // stride + 1
    Wout = (W + 2 * pad - dilation * (kw - 1) - 1) // stride + 1

    kwargs = dict(stride=stride, pad=pad, dilation=dilation, groups=groups,
                  act=act, Hout=Hout, Wout=Wout, out_dtype=x.dtype)
    if Cin_g == 1:
        # Depthwise (one input channel per group): dedicated VPU kernel.
        return _conv_depthwise(x, w, **kwargs)
    # TODO(synk): grouped convs with Cout_g < 8 still use the MXU path with a
    # sublane-padded output tile; block-diagonal packing would improve them.
    return _conv_matmul(x, w, **kwargs)


# ----------------------------------------------------------------------------
# Pure-JAX reference (PyTorch Conv2d bias=False + activation).
# ----------------------------------------------------------------------------
def conv2d_bn_ref(x, w, *, stride=1, pad=0, dilation=1, groups=1, act=None):
    y = lax.conv_general_dilated(
        x, w,
        window_strides=(stride, stride),
        padding=((pad, pad), (pad, pad)),
        rhs_dilation=(dilation, dilation),
        dimension_numbers=('NCHW', 'OIHW', 'NCHW'),
        feature_group_count=groups)
    return _apply_act(y, act)


# ----------------------------------------------------------------------------
# Test
# ----------------------------------------------------------------------------
if __name__ == "__main__":
    key = jax.random.PRNGKey(0)
    B, H, W = 2, 16, 16

    configs = [
        # Default Conv2d_BN: 1x1 conv, no activation (Identity).
        dict(in_ch=4,  out_ch=32, ks=1, stride=1, pad=0, dilation=1, groups=1, act=None),
        # 3x3, pad=1, fused ReLU.
        dict(in_ch=16, out_ch=16, ks=3, stride=1, pad=1, dilation=1, groups=1, act="relu"),
        # Depthwise 3x3, stride 2.
        dict(in_ch=16, out_ch=16, ks=3, stride=2, pad=1, dilation=1, groups=16, act=None),
    ]

    for cfg in configs:
        key, kx, kw_ = jax.random.split(key, 3)
        x = jax.random.normal(kx, (B, cfg["in_ch"], H, W), jnp.float32)
        # PyTorch-style fan_out init from the module.
        fan_out = cfg["ks"] * cfg["ks"] * cfg["out_ch"]
        w = (jax.random.normal(
                kw_, (cfg["out_ch"], cfg["in_ch"] // cfg["groups"],
                      cfg["ks"], cfg["ks"]), jnp.float32)
             * math.sqrt(2.0 / fan_out))

        kw_args = dict(stride=cfg["stride"], pad=cfg["pad"],
                       dilation=cfg["dilation"], groups=cfg["groups"],
                       act=cfg["act"])

        out = conv2d_bn_pallas(x, w, **kw_args)
        out = jax.block_until_ready(out)

        ref = conv2d_bn_ref(x, w, **kw_args)
        ref = jax.block_until_ready(ref)

        assert out.shape == ref.shape, (out.shape, ref.shape)
        assert bool(jnp.all(jnp.isfinite(out)))
        assert bool(jnp.allclose(out, ref, rtol=2e-2, atol=2e-2)), \
            f"kernel/ref mismatch for config {cfg}"

    print("KERNEL_OK")
</pallas_src>

<mosaic_0001>
module attributes {stable_mosaic.version = 11 : i64} {
  func.func @_mm_kernel_f32(%arg0: i32, %arg1: i32, %arg2: i32, %arg3: i32, %arg4: memref<1x32x4xbf16, #tpu.memory_space<vmem>>, %arg5: memref<1x4x256xbf16, #tpu.memory_space<vmem>>, %arg6: memref<1x32x256xf32, #tpu.memory_space<vmem>>) attributes {dimension_semantics = [#tpu.dimension_semantics<parallel>, #tpu.dimension_semantics<parallel>, #tpu.dimension_semantics<parallel>, #tpu.dimension_semantics<arbitrary>], iteration_bounds = array<i64: 2, 1, 1, 1>, scalar_prefetch = 0 : i64, scratch_operands = 0 : i64, tpu.core_type = #tpu.core_type<tc>, window_params = [{transform_indices = @transform_0, window_bounds = array<i64: 1, 32, 4>}, {transform_indices = @transform_1, window_bounds = array<i64: 1, 4, 256>}, {transform_indices = @transform_2, window_bounds = array<i64: 1, 32, 256>}]} {
    %c0 = arith.constant 0 : index
    %c0_0 = arith.constant 0 : index
    %c0_1 = arith.constant 0 : index
    %0 = vector.load %arg4[%c0, %c0_0, %c0_1] : memref<1x32x4xbf16, #tpu.memory_space<vmem>>, vector<1x32x4xbf16>
    %1 = vector.shape_cast %0 : vector<1x32x4xbf16> to vector<32x4xbf16>
    %c0_2 = arith.constant 0 : index
    %c0_3 = arith.constant 0 : index
    %c0_4 = arith.constant 0 : index
    %2 = vector.load %arg5[%c0_2, %c0_3, %c0_4] : memref<1x4x256xbf16, #tpu.memory_space<vmem>>, vector<1x4x256xbf16>
    %3 = vector.shape_cast %2 : vector<1x4x256xbf16> to vector<4x256xbf16>
    %cst = arith.constant dense<0.000000e+00> : vector<32x256xf32>
    %4 = tpu.matmul %1, %3, %cst {dimension_numbers = #tpu.dot_dimension_numbers<[1], [0], [0], [1], [0, 0, 1, 1], [], []>} : vector<32x4xbf16>, vector<4x256xbf16>, vector<32x256xf32> -> vector<32x256xf32>
    %c0_5 = arith.constant 0 : index
    %c0_6 = arith.constant 0 : index
    %c0_7 = arith.constant 0 : index
    %5 = vector.load %arg6[%c0_5, %c0_6, %c0_7] : memref<1x32x256xf32, #tpu.memory_space<vmem>>, vector<1x32x256xf32>
    %6 = vector.shape_cast %5 : vector<1x32x256xf32> to vector<32x256xf32>
    %7 = vector.shape_cast %4 : vector<32x256xf32> to vector<1x32x256xf32>
    tpu.vector_store %arg6[%c0_5, %c0_6, %c0_7], %7 {strides = array<i32>} : memref<1x32x256xf32, #tpu.memory_space<vmem>>, vector<1x32x256xf32>,
    return
  }
  func.func @transform_0(%arg0: i32, %arg1: i32, %arg2: i32, %arg3: i32) -> (i32, i32, i32) {
    %c0_i32 = arith.constant 0 : i32
    %c0_i32_0 = arith.constant 0 : i32
    %c0_i32_1 = arith.constant 0 : i32
    return %c0_i32, %arg1, %c0_i32_0 : i32, i32, i32
  }
  func.func @transform_1(%arg0: i32, %arg1: i32, %arg2: i32, %arg3: i32) -> (i32, i32, i32) {
    %c0_i32 = arith.constant 0 : i32
    return %arg0, %arg3, %arg2 : i32, i32, i32
  }
  func.func @transform_2(%arg0: i32, %arg1: i32, %arg2: i32, %arg3: i32) -> (i32, i32, i32) {
    %c0_i32 = arith.constant 0 : i32
    return %arg0, %arg1, %arg2 : i32, i32, i32
  }
}

</mosaic_0001>

<bundles_post_ra>
// kernel: conv2d_bn_pallas.1
= control target key start
LH: loop header
LB: loop body
LE: loop exit
PB: predicated region body
PF: predicated region fallthrough
CT: control target
= control target key end

     0   :  { %s568_s9 = smov 0   ;;  %s570_s10 = smov 0   ;;  %s607_s0 = inlined_call_operand.vmem [shape: bf16[1,32,4], index: 0, kind: input, shape index: {}]   ;;  %s608_s1 = inlined_call_operand.vmem [shape: bf16[2,4,256], index: 1, kind: input, shape index: {}]   ;;  %s609_s2 = inlined_call_operand.vmem [shape: f32[2,32,256], index: 2, kind: output, shape index: {}]  }
   0x1   :  { %s572_s11 = smov 0  }
   0x2 LB: > { %s38_s12 = sadd.s32 1, %s546_s10  ;;  %p484_p0 = scmp.ge.s32.totalorder %s550_s11, 1  ;;  %s550_s11 = sphi %s572_s11, %s12_s11   ;;  %s546_s10 = sphi %s570_s10, %s611_s10   ;;  %s542_s9 = sphi %s568_s9, %s610_s9  }
   0x3   : > { %p40_p1 = scmp.ge.s32.totalorder %s38_s12, 2  ;;  %p166_p2 = scmp.lt.s32.totalorder %s550_s11, 3 }
   0x5   : > { %s613_s12 = smov (%p40_p1, %s38_s12), 0  ;;  %p167_p3 = pnand %p484_p0, %p166_p2 }
   0x6   : > { %p217_p4 = scmp.lt.s32.totalorder (!%p167_p3), %s542_s9, 1 }
   0x7   : > { %170 = sbr.rel (%p167_p3) target bundleno = 222 (0xde), region = 28 }
   0xc   : > { %v552_v0 = vmov 0   ;;  %s615_s9 = smov (!%p217_p4, %s542_s9), 1  ;;  %vm278_vm0 = vcmask 1041408   ;;  %v526_v4 = vld [vmem:[%s607_s0] sm:$0xff]   ;;  %v527_v5 = vld [vmem:[%s607_s0 + $0x8] sm:$0xff]   ;;  %vm271_vm1 = vcmask 31744  }
   0xd   : > { %317 = vmatprep.mubr.bf16.mxu0 %v552_v0  ;;  %327 = vmatprep.mubr.bf16.mxu1 %v552_v0  ;;  %s497_s13 = sshll.u32 %s615_s9, 2  ;;  %s498_s21 = sshll.u32 %s615_s9, 6 }
   0xe   : > { %s228_s16 = scalar_lea.vmem %s608_s1, %s497_s13  ;;  %s243_s24 = scalar_lea.vmem %s609_s2, %s498_s21 }
   0xf   : > { %v491_v1 = vld.sshfl [vmem:[%s228_s16] sm:$0x33 pattern:$0x76325410] }
  0x10   : > { %v270_v2 = vcombine.high %v491_v1, %v491_v1  ;;  %v280_v3 = vsel %vm278_vm0, %v491_v1, 0 }
  0x12   : > { %492 = vmatprep.subr.msk.bf16.mxu0 %vm278_vm0, %v270_v2  ;;  %499 = vmatprep.subr.msk.bf16.mxu1 %vm278_vm0, %v270_v2 }
  0x13   : > { %300 = vmatpush1.bf16.msra.mxu0 %v280_v3  ;;  %500 = vmatpush1.bf16.msra.mxu1 %v280_v3 }
  0x16   : > { %493 = vmatmul.mubr.msk.bf16.vlgmr.msra.gmra.mxu0 %vm271_vm1, %v526_v4  ;;  %494 = vmatmul.mubr.msk.bf16.vlgmr.msra.gmra.mxu1 %vm271_vm1, %v527_v5 }
  0xd6   : > { %v319_v6 = vpop.f32.mrf.mxu0  ;;  %v329_v7 = vpop.f32.mrf.mxu1 }
  0xd7   : > { %338 = vst [vmem:[%s243_s24] sm:$0xff] %v319_v6  ;;  %342 = vst [vmem:[%s243_s24 + $0x20] sm:$0xff] %v329_v7 }
  0xd8   : > { %v321_v8 = vpop.f32.mrf.mxu0  ;;  %v331_v9 = vpop.f32.mrf.mxu1 }
  0xd9   : > { %339 = vst [vmem:[%s243_s24 + $0x8] sm:$0xff] %v321_v8  ;;  %343 = vst [vmem:[%s243_s24 + $0x28] sm:$0xff] %v331_v9 }
  0xda   : > { %v323_v10 = vpop.f32.mrf.mxu0  ;;  %v333_v11 = vpop.f32.mrf.mxu1 }
  0xdb   : > { %340 = vst [vmem:[%s243_s24 + $0x10] sm:$0xff] %v323_v10  ;;  %344 = vst [vmem:[%s243_s24 + $0x30] sm:$0xff] %v333_v11 }
  0xdc   : > { %v325_v12 = vpop.f32.mrf.mxu0  ;;  %v335_v13 = vpop.f32.mrf.mxu1 }
  0xdd   : > { %341 = vst [vmem:[%s243_s24 + $0x18] sm:$0xff] %v325_v12  ;;  %345 = vst [vmem:[%s243_s24 + $0x38] sm:$0xff] %v335_v13 }
  0xde PF: > { %s12_s11 = sadd.s32 1, %s550_s11   ;;  %s610_s9 = smov %s546_s10 }
  0xdf   : > { %p9_p5 = scmp.ge.s32.totalorder %s12_s11, 4   ;;  %s611_s10 = smov %s613_s12 }
  0xe1   :  { %11 = sbr.rel (!%p9_p5) target bundleno = 2 (0x2), region = 61 }

</bundles_post_ra>
